<compile_context>
chip_gen: v7x
topology: tpu7x:2x2x1
jax: 0.10.0
libtpu: 0.0.40
codegen_flags: <defaults>
</compile_context>

<pallas_src>
import functools

import jax
import jax.numpy as jnp
from jax.experimental import pallas as pl
from jax.experimental.pallas import tpu as pltpu

_LANES = 128
# Conservative per-call VMEM budget for the double-buffered (in + out + logdet)
# blocks: fits v5e's 16 MiB scoped default and v7x's 32 MiB with headroom.
_VMEM_BUDGET_BYTES = 12 * 1024 * 1024


def _affine_coupling_kernel(
    x_ref,       # (C, TB)      f32   channels on sublanes, batch on lanes
    w1_ref,      # (MID, C/2)   f32
    b1_ref,      # (MID, 1)     f32
    w2_ref,      # (MID, MID)   f32
    b2_ref,      # (MID, 1)     f32
    w3_ref,      # (C, MID)     f32   ZeroLinear weight, pre-scaled by exp(3*s3)
    b3_ref,      # (C, 1)       f32   pre-scaled bias, "+2" folded into top half
    out_ref,     # (C, TB)      f32
    logdet_ref,  # (1, TB)      f32
    *,
    c_half,
    reverse,
):
    x = x_ref[...]                      # (C, TB)
    x_a = x[:c_half, :]                 # (C/2, TB)
    x_b = x[c_half:, :]                 # (C/2, TB)

    # Linear(in//2 -> mid) + ReLU  (PyTorch (out, in) weight layout, so the
    # transposed-compute matmul is simply W @ x^T on the MXU).
    h = jnp.dot(w1_ref[...], x_a, preferred_element_type=jnp.float32) + b1_ref[...]
    h = jnp.maximum(h, 0.0)

    # Linear(mid -> mid) + ReLU
    h = jnp.dot(w2_ref[...], h, preferred_element_type=jnp.float32) + b2_ref[...]
    h = jnp.maximum(h, 0.0)

    # Folded ZeroLinear: st = W3' @ h + b3'  with  W3' = W3*exp(3*s3),
    # b3' = b3*exp(3*s3) (+2 on the log_s half)  ==>  z = log_s + 2 directly.
    st = jnp.dot(w3_ref[...], h, preferred_element_type=jnp.float32) + b3_ref[...]
    z = st[:c_half, :]                  # log_s + 2
    t = st[c_half:, :]

    # Stable sigmoid pieces:  s = 1/(1+e),  1/s = 1+e,  log s = -log(1+e)
    e = jnp.exp(-z)                     # EUP
    log1pe = jnp.log(1.0 + e)           # no log(sigmoid) -inf blowup

    if reverse:
        y_b = x_b * (1.0 + e) - t       # division-free reverse
        log_det = jnp.sum(log1pe, axis=0, keepdims=True)        # = -sum(log s)
    else:
        s = pl.reciprocal(1.0 + e)      # exact reciprocal
        y_b = (x_b + t) * s
        log_det = -jnp.sum(log1pe, axis=0, keepdims=True)       # =  sum(log s)

    # Store the two halves directly — no concatenate / vreg relayout.
    out_ref[:c_half, :] = x_a
    out_ref[c_half:, :] = y_b
    logdet_ref[...] = log_det


def _round_up(v, m):
    return ((v + m - 1) // m) * m


def _pick_tile(batch, channels, block_b):
    """Batch-tile size: lane-dense, VMEM-budgeted, >=2 grid steps when possible."""
    bytes_per_col = (2 * channels + 1) * 4 * 2        # (in + out + logdet) double-buffered
    tb_cap = min(block_b, _VMEM_BUDGET_BYTES // bytes_per_col)
    tb_cap = max(_LANES, (tb_cap // _LANES) * _LANES)
    # Keep at least 2 grid steps when the batch allows (v7x: 2 TensorCores share
    # the "parallel" batch axis); on v5e/v6e this just bounds padding waste.
    n_steps = max(2, pl.cdiv(batch, tb_cap))
    tb = min(tb_cap, _round_up(pl.cdiv(batch, n_steps), _LANES))
    return tb


def _fold_params(params, c_half):
    """Fold exp(3*scale3) into W3/b3 and the sigmoid '+2' into the log_s bias."""
    w1, b1, w2, b2, w3, b3, s3 = params
    mid = w1.shape[0]
    g = jnp.exp(3.0 * s3)                              # (C,)
    w3f = w3 * g[:, None]
    b3f = b3 * g
    b3f = b3f.at[:c_half].add(2.0)
    return (w1, b1.reshape(mid, 1), w2, b2.reshape(mid, 1),
            w3f, b3f.reshape(-1, 1))


def affine_coupling_cmajor(x_t, params, *, reverse=False, block_b=32768):
    """Core op in (C, B) layout: x_t (C, B) -> (y_t (C, B), log_det (B,)).

    Use this directly when chaining coupling layers so activations stay in the
    lane-dense (C, B) layout end-to-end (no per-layer transpose round-trips).
    """
    C, B = x_t.shape
    c_half = C // 2
    w1, b1c, w2, b2c, w3f, b3c = _fold_params(params, c_half)
    mid = w1.shape[0]

    tb = _pick_tile(B, C, block_b)
    bp = _round_up(B, tb)
    if bp != B:                                        # skip the pad when unneeded
        x_t = jnp.pad(x_t, ((0, 0), (0, bp - B)))

    kernel = functools.partial(
        _affine_coupling_kernel, c_half=c_half, reverse=reverse
    )

    def resident(shape):
        # Full-array block, constant index map -> stays resident in VMEM.
        return pl.BlockSpec(shape, lambda i: (0, 0))

    grid_spec = pltpu.PrefetchScalarGridSpec(
        num_scalar_prefetch=0,
        grid=(bp // tb,),
        in_specs=[
            pl.BlockSpec((C, tb), lambda i: (0, i)),          # x tile
            resident((mid, c_half)), resident((mid, 1)),      # W1, b1
            resident((mid, mid)), resident((mid, 1)),         # W2, b2
            resident((C, mid)), resident((C, 1)),             # W3', b3'
        ],
        out_specs=[
            pl.BlockSpec((C, tb), lambda i: (0, i)),          # y tile
            pl.BlockSpec((1, tb), lambda i: (0, i)),          # log_det tile
        ],
    )

    # Advisory cost hint so XLA schedules the surrounding ops around the call.
    param_bytes = 4 * (mid * c_half + mid + mid * mid + mid + C * mid + C)
    cost = pl.CostEstimate(
        flops=2 * bp * (mid * c_half + mid * mid + C * mid),
        transcendentals=bp * C,
        bytes_accessed=(2 * C + 1) * bp * 4 + param_bytes,
    )

    out_t, logdet_t = pl.pallas_call(
        kernel,
        out_shape=(
            jax.ShapeDtypeStruct((C, bp), jnp.float32),
            jax.ShapeDtypeStruct((1, bp), jnp.float32),
        ),
        grid_spec=grid_spec,
        compiler_params=pltpu.CompilerParams(
            dimension_semantics=("parallel",),                # samples independent
        ),
        cost_estimate=cost,
    )(x_t, w1, b1c, w2, b2c, w3f, b3c)

    if bp != B:
        return out_t[:, :B], logdet_t[0, :B]
    return out_t, logdet_t[0, :]


def affine_coupling(x, params, *, reverse=False, block_b=32768):
    """Module-API wrapper: x (B, in_channels) -> (y (B, in_channels), log_det (B,)).

    Transposes exactly once at the boundary; prefer `affine_coupling_cmajor`
    inside a flow to avoid per-layer layout round-trips entirely.
    """
    y_t, log_det = affine_coupling_cmajor(
        x.T, params, reverse=reverse, block_b=block_b
    )
    return y_t.T, log_det


def init_affine_coupling_params(key, in_channels, mid_channels):
    """Parameters in PyTorch Linear layout: weight (out, in), bias (out,)."""
    c_half = in_channels // 2
    k1, k2, k3, k4, k5 = jax.random.split(key, 5)
    # s_t[0] / s_t[3]: normal(0, 0.05) weights, zero bias (matches module init).
    w1 = 0.05 * jax.random.normal(k1, (mid_channels, c_half), jnp.float32)
    b1 = jnp.zeros((mid_channels,), jnp.float32)
    w2 = 0.05 * jax.random.normal(k2, (mid_channels, mid_channels), jnp.float32)
    b2 = jnp.zeros((mid_channels,), jnp.float32)
    # ZeroLinear is zero-initialized in PyTorch; small synthetic values here so
    # the test exercises a non-trivial s / t / log_det path (forward semantics
    # are identical regardless of parameter values).
    w3 = 0.05 * jax.random.normal(k3, (in_channels, mid_channels), jnp.float32)
    b3 = 0.01 * jax.random.normal(k4, (in_channels,), jnp.float32)
    s3 = 0.10 * jax.random.normal(k5, (in_channels,), jnp.float32)
    return (w1, b1, w2, b2, w3, b3, s3)


def affine_coupling_reference(x, params, *, reverse=False):
    """Pure-JAX reference mirroring the PyTorch forward (unfolded params)."""
    w1, b1, w2, b2, w3, b3, s3 = params
    c_half = x.shape[1] // 2
    x_a, x_b = x[:, :c_half], x[:, c_half:]
    h = jnp.maximum(x_a @ w1.T + b1[None, :], 0.0)
    h = jnp.maximum(h @ w2.T + b2[None, :], 0.0)
    st = (h @ w3.T + b3[None, :]) * jnp.exp(s3[None, :] * 3.0)
    log_s, t = st[:, :c_half], st[:, c_half:]
    s = jax.nn.sigmoid(log_s + 2.0)
    log_det = jnp.sum(jnp.log(s), axis=1)
    if reverse:
        y_b = x_b / s - t
        log_det = -log_det
    else:
        y_b = (x_b + t) * s
    return jnp.concatenate([x_a, y_b], axis=1), log_det


def _run_case(key, B, C, MID):
    k_x, k_p = jax.random.split(key)
    x = jax.random.normal(k_x, (B, C), dtype=jnp.float32)
    params = init_affine_coupling_params(k_p, C, MID)

    # Forward
    y, log_det = affine_coupling(x, params, reverse=False)
    y = jax.block_until_ready(y)
    log_det = jax.block_until_ready(log_det)

    assert y.shape == (B, C), y.shape
    assert log_det.shape == (B,), log_det.shape
    assert bool(jnp.all(jnp.isfinite(y)))
    assert bool(jnp.all(jnp.isfinite(log_det)))

    y_ref, ld_ref = affine_coupling_reference(x, params, reverse=False)
    assert bool(jnp.allclose(y, y_ref, rtol=1e-5, atol=1e-5))
    assert bool(jnp.allclose(log_det, ld_ref, rtol=1e-5, atol=1e-5))

    # Reverse inverts forward (and negates log_det)
    x_rec, ld_rev = affine_coupling(y, params, reverse=True)
    x_rec = jax.block_until_ready(x_rec)
    assert bool(jnp.allclose(x_rec, x, rtol=1e-4, atol=1e-4))
    assert bool(jnp.allclose(ld_rev, -ld_ref, rtol=1e-5, atol=1e-5))

    # (C, B)-layout core path (no boundary transposes) matches too.
    y_t, ld_t = affine_coupling_cmajor(x.T, params, reverse=False)
    y_t = jax.block_until_ready(y_t)
    assert bool(jnp.allclose(y_t.T, y_ref, rtol=1e-5, atol=1e-5))
    assert bool(jnp.allclose(ld_t, ld_ref, rtol=1e-5, atol=1e-5))


if __name__ == "__main__":
    key = jax.random.PRNGKey(0)
    k0, k1 = jax.random.split(key)

    # Small shapes: batch=16, in_channels=8 (split 4+4), mid_channels=32.
    _run_case(k0, B=16, C=8, MID=32)
    # Non-multiple-of-128 batch: exercises the pad path and a 2-step grid.
    _run_case(k1, B=300, C=8, MID=32)

    print("KERNEL_OK")
</pallas_src>

<mosaic_0001>
module attributes {stable_mosaic.version = 11 : i64} {
  func.func @_affine_coupling_kernel(%arg0: i32, %arg1: memref<8x128xf32, #tpu.memory_space<vmem>>, %arg2: memref<32x4xf32, #tpu.memory_space<vmem>>, %arg3: memref<32x1xf32, #tpu.memory_space<vmem>>, %arg4: memref<32x32xf32, #tpu.memory_space<vmem>>, %arg5: memref<32x1xf32, #tpu.memory_space<vmem>>, %arg6: memref<8x32xf32, #tpu.memory_space<vmem>>, %arg7: memref<8x1xf32, #tpu.memory_space<vmem>>, %arg8: memref<8x128xf32, #tpu.memory_space<vmem>>, %arg9: memref<1x128xf32, #tpu.memory_space<vmem>>) attributes {dimension_semantics = [#tpu.dimension_semantics<parallel>], iteration_bounds = array<i64: 1>, scalar_prefetch = 0 : i64, scratch_operands = 0 : i64, tpu.core_type = #tpu.core_type<tc>, window_params = [{transform_indices = @transform_0, window_bounds = array<i64: 8, 128>}, {pipeline_mode = #tpu.pipeline_mode<synchronous>, transform_indices = @transform_1, window_bounds = array<i64: 32, 4>}, {pipeline_mode = #tpu.pipeline_mode<synchronous>, transform_indices = @transform_2, window_bounds = array<i64: 32, 1>}, {pipeline_mode = #tpu.pipeline_mode<synchronous>, transform_indices = @transform_3, window_bounds = array<i64: 32, 32>}, {pipeline_mode = #tpu.pipeline_mode<synchronous>, transform_indices = @transform_4, window_bounds = array<i64: 32, 1>}, {pipeline_mode = #tpu.pipeline_mode<synchronous>, transform_indices = @transform_5, window_bounds = array<i64: 8, 32>}, {pipeline_mode = #tpu.pipeline_mode<synchronous>, transform_indices = @transform_6, window_bounds = array<i64: 8, 1>}, {transform_indices = @transform_7, window_bounds = array<i64: 8, 128>}, {transform_indices = @transform_8, window_bounds = array<i64: 1, 128>}]} {
    %c0 = arith.constant 0 : index
    %c0_0 = arith.constant 0 : index
    %0 = vector.load %arg1[%c0, %c0_0] : memref<8x128xf32, #tpu.memory_space<vmem>>, vector<8x128xf32>
    %1 = vector.extract_strided_slice %0 {offsets = [0, 0], sizes = [4, 128], strides = [1, 1]} : vector<8x128xf32> to vector<4x128xf32>
    %2 = vector.extract_strided_slice %0 {offsets = [4, 0], sizes = [4, 128], strides = [1, 1]} : vector<8x128xf32> to vector<4x128xf32>
    %c0_1 = arith.constant 0 : index
    %c0_2 = arith.constant 0 : index
    %3 = vector.load %arg2[%c0_1, %c0_2] : memref<32x4xf32, #tpu.memory_space<vmem>>, vector<32x4xf32>
    %cst = arith.constant dense<0.000000e+00> : vector<32x128xf32>
    %4 = tpu.matmul %3, %1, %cst {dimension_numbers = #tpu.dot_dimension_numbers<[1], [0], [0], [1], [0, 0, 1, 1], [], []>} : vector<32x4xf32>, vector<4x128xf32>, vector<32x128xf32> -> vector<32x128xf32>
    %c0_3 = arith.constant 0 : index
    %c0_4 = arith.constant 0 : index
    %5 = vector.load %arg3[%c0_3, %c0_4] : memref<32x1xf32, #tpu.memory_space<vmem>>, vector<32x1xf32>
    %6 = vector.broadcast %5 : vector<32x1xf32> to vector<32x128xf32>
    %7 = arith.addf %4, %6 : vector<32x128xf32>
    %cst_5 = arith.constant 0.000000e+00 : f32
    %8 = vector.broadcast %cst_5 : f32 to vector<32x128xf32>
    %9 = arith.maximumf %7, %8 : vector<32x128xf32>
    %c0_6 = arith.constant 0 : index
    %c0_7 = arith.constant 0 : index
    %10 = vector.load %arg4[%c0_6, %c0_7] : memref<32x32xf32, #tpu.memory_space<vmem>>, vector<32x32xf32>
    %cst_8 = arith.constant dense<0.000000e+00> : vector<32x128xf32>
    %11 = tpu.matmul %10, %9, %cst_8 {dimension_numbers = #tpu.dot_dimension_numbers<[1], [0], [0], [1], [0, 0, 1, 1], [], []>} : vector<32x32xf32>, vector<32x128xf32>, vector<32x128xf32> -> vector<32x128xf32>
    %c0_9 = arith.constant 0 : index
    %c0_10 = arith.constant 0 : index
    %12 = vector.load %arg5[%c0_9, %c0_10] : memref<32x1xf32, #tpu.memory_space<vmem>>, vector<32x1xf32>
    %13 = vector.broadcast %12 : vector<32x1xf32> to vector<32x128xf32>
    %14 = arith.addf %11, %13 : vector<32x128xf32>
    %cst_11 = arith.constant 0.000000e+00 : f32
    %15 = vector.broadcast %cst_11 : f32 to vector<32x128xf32>
    %16 = arith.maximumf %14, %15 : vector<32x128xf32>
    %c0_12 = arith.constant 0 : index
    %c0_13 = arith.constant 0 : index
    %17 = vector.load %arg6[%c0_12, %c0_13] : memref<8x32xf32, #tpu.memory_space<vmem>>, vector<8x32xf32>
    %cst_14 = arith.constant dense<0.000000e+00> : vector<8x128xf32>
    %18 = tpu.matmul %17, %16, %cst_14 {dimension_numbers = #tpu.dot_dimension_numbers<[1], [0], [0], [1], [0, 0, 1, 1], [], []>} : vector<8x32xf32>, vector<32x128xf32>, vector<8x128xf32> -> vector<8x128xf32>
    %c0_15 = arith.constant 0 : index
    %c0_16 = arith.constant 0 : index
    %19 = vector.load %arg7[%c0_15, %c0_16] : memref<8x1xf32, #tpu.memory_space<vmem>>, vector<8x1xf32>
    %20 = vector.broadcast %19 : vector<8x1xf32> to vector<8x128xf32>
    %21 = arith.addf %18, %20 : vector<8x128xf32>
    %22 = vector.extract_strided_slice %21 {offsets = [0, 0], sizes = [4, 128], strides = [1, 1]} : vector<8x128xf32> to vector<4x128xf32>
    %23 = vector.extract_strided_slice %21 {offsets = [4, 0], sizes = [4, 128], strides = [1, 1]} : vector<8x128xf32> to vector<4x128xf32>
    %cst_17 = arith.constant 0.000000e+00 : f32
    %24 = vector.broadcast %cst_17 : f32 to vector<4x128xf32>
    %25 = arith.subf %24, %22 : vector<4x128xf32>
    %26 = math.exp %25 : vector<4x128xf32>
    %cst_18 = arith.constant 1.000000e+00 : f32
    %27 = vector.broadcast %cst_18 : f32 to vector<4x128xf32>
    %28 = arith.addf %27, %26 : vector<4x128xf32>
    %29 = math.log %28 : vector<4x128xf32>
    %cst_19 = arith.constant 1.000000e+00 : f32
    %30 = vector.broadcast %cst_19 : f32 to vector<4x128xf32>
    %31 = arith.addf %30, %26 : vector<4x128xf32>
    %32 = tpu.reciprocal %31 : vector<4x128xf32> -> vector<4x128xf32>
    %33 = arith.addf %2, %23 : vector<4x128xf32>
    %34 = arith.mulf %33, %32 : vector<4x128xf32>
    %cst_20 = arith.constant dense<0.000000e+00> : vector<128xf32>
    %35 = vector.multi_reduction <add>, %29, %cst_20 [0] : vector<4x128xf32> to vector<128xf32>
    %36 = vector.shape_cast %35 : vector<128xf32> to vector<1x128xf32>
    %cst_21 = arith.constant 0.000000e+00 : f32
    %37 = vector.broadcast %cst_21 : f32 to vector<1x128xf32>
    %38 = arith.subf %37, %36 : vector<1x128xf32>
    %c0_22 = arith.constant 0 : index
    %c0_23 = arith.constant 0 : index
    %39 = vector.load %arg8[%c0_22, %c0_23] : memref<8x128xf32, #tpu.memory_space<vmem>>, vector<4x128xf32>
    tpu.vector_store %arg8[%c0_22, %c0_23], %1 {strides = array<i32>} : memref<8x128xf32, #tpu.memory_space<vmem>>, vector<4x128xf32>,
    %c4 = arith.constant 4 : index
    %c0_24 = arith.constant 0 : index
    %40 = vector.load %arg8[%c4, %c0_24] : memref<8x128xf32, #tpu.memory_space<vmem>>, vector<4x128xf32>
    tpu.vector_store %arg8[%c4, %c0_24], %34 {strides = array<i32>} : memref<8x128xf32, #tpu.memory_space<vmem>>, vector<4x128xf32>,
    %c0_25 = arith.constant 0 : index
    %c0_26 = arith.constant 0 : index
    %41 = vector.load %arg9[%c0_25, %c0_26] : memref<1x128xf32, #tpu.memory_space<vmem>>, vector<1x128xf32>
    tpu.vector_store %arg9[%c0_25, %c0_26], %38 {strides = array<i32>} : memref<1x128xf32, #tpu.memory_space<vmem>>, vector<1x128xf32>,
    return
  }
  func.func @transform_0(%arg0: i32) -> (i32, i32) {
    %c0_i32 = arith.constant 0 : i32
    %c0_i32_0 = arith.constant 0 : i32
    return %c0_i32, %arg0 : i32, i32
  }
  func.func @transform_1(%arg0: i32) -> (i32, i32) {
    %c0_i32 = arith.constant 0 : i32
    %c0_i32_0 = arith.constant 0 : i32
    %c0_i32_1 = arith.constant 0 : i32
    return %c0_i32, %c0_i32_0 : i32, i32
  }
  func.func @transform_2(%arg0: i32) -> (i32, i32) {
    %c0_i32 = arith.constant 0 : i32
    %c0_i32_0 = arith.constant 0 : i32
    %c0_i32_1 = arith.constant 0 : i32
    return %c0_i32, %c0_i32_0 : i32, i32
  }
  func.func @transform_3(%arg0: i32) -> (i32, i32) {
    %c0_i32 = arith.constant 0 : i32
    %c0_i32_0 = arith.constant 0 : i32
    %c0_i32_1 = arith.constant 0 : i32
    return %c0_i32, %c0_i32_0 : i32, i32
  }
  func.func @transform_4(%arg0: i32) -> (i32, i32) {
    %c0_i32 = arith.constant 0 : i32
    %c0_i32_0 = arith.constant 0 : i32
    %c0_i32_1 = arith.constant 0 : i32
    return %c0_i32, %c0_i32_0 : i32, i32
  }
  func.func @transform_5(%arg0: i32) -> (i32, i32) {
    %c0_i32 = arith.constant 0 : i32
    %c0_i32_0 = arith.constant 0 : i32
    %c0_i32_1 = arith.constant 0 : i32
    return %c0_i32, %c0_i32_0 : i32, i32
  }
  func.func @transform_6(%arg0: i32) -> (i32, i32) {
    %c0_i32 = arith.constant 0 : i32
    %c0_i32_0 = arith.constant 0 : i32
    %c0_i32_1 = arith.constant 0 : i32
    return %c0_i32, %c0_i32_0 : i32, i32
  }
  func.func @transform_7(%arg0: i32) -> (i32, i32) {
    %c0_i32 = arith.constant 0 : i32
    %c0_i32_0 = arith.constant 0 : i32
    return %c0_i32, %arg0 : i32, i32
  }
  func.func @transform_8(%arg0: i32) -> (i32, i32) {
    %c0_i32 = arith.constant 0 : i32
    %c0_i32_0 = arith.constant 0 : i32
    return %c0_i32, %arg0 : i32, i32
  }
}

</mosaic_0001>

<bundles_post_ra>
// kernel: tpu_custom_call.1
= control target key start
LH: loop header
LB: loop body
LE: loop exit
PB: predicated region body
PF: predicated region fallthrough
CT: control target
= control target key end

     0   :  { %14 = vsyncpa [#allocation3], 0  ;;  %vm72_vm0 = vcmask 1043456   ;;  %vm59_vm1 = vcmask 31744   ;;  %v563_v5 = vmov 0   ;;  %s713_s0 = inlined_call_operand.vmem [shape: f32[8,128], index: 0, kind: input, shape index: {}]   ;;  %s714_s1 = inlined_call_operand.vmem [shape: f32[32,4], index: 1, kind: input, shape index: {}]   ;;  %s715_s2 = inlined_call_operand.vmem [shape: f32[32,1], index: 2, kind: input, shape index: {}]   ;;  %s716_s3 = inlined_call_operand.vmem [shape: f32[32,32], index: 3, kind: input, shape index: {}]   ;;  %s717_s4 = inlined_call_operand.vmem [shape: f32[32,1], index: 4, kind: input, shape index: {}]   ;;  %s718_s5 = inlined_call_operand.vmem [shape: f32[8,32], index: 5, kind: input, shape index: {}]   ;;  %s719_s6 = inlined_call_operand.vmem [shape: f32[8,1], index: 6, kind: input, shape index: {}]   ;;  %s720_s7 = inlined_call_operand.hbm [shape: f32[8,128], index: 7, kind: output, shape index: {0}]   ;;  %s721_s8 = inlined_call_operand.hbm [shape: f32[1,128], index: 8, kind: output, shape index: {1}]  }
   0x1   :  { %v617_v0 = vld [vmem:[%s713_s0] sm:$0xff]  ;;  %v32_v2 = vld [vmem:[%s714_s1 + $0x8] sm:$0xff]  ;;  %v33_v3 = vld [vmem:[%s714_s1 + $0x10] sm:$0xff]  ;;  %507 = vset.pattern.permute.xlu0 %v563_v5  ;;  %508 = vset.pattern.permute.xlu1 %v563_v5 }
   0x2   :  { %v31_v1 = vld [vmem:[%s714_s1] sm:$0xff]  ;;  %454 = vmatprep.subr.msk.mxu0 %vm72_vm0, %v617_v0  ;;  %395 = vst [vmem:[#allocation2] sm:$0xf] %v617_v0  ;;  %v37_v6 = vld [vmem:[%s715_s2 + $0x10] sm:$0xff]  ;;  %v34_v7 = vld [vmem:[%s714_s1 + $0x18] sm:$0xff] }
   0x3   :  { %456 = vmatprep.mubr.msk.f32.mxu0 %vm59_vm1, %v31_v1  ;;  %v35_v4 = vld [vmem:[%s715_s2] sm:$0xff]  ;;  %455 = vmatpush3.msk.msra.mxu0 %vm72_vm0, %v617_v0  ;;  %v36_v8 = vld [vmem:[%s715_s2 + $0x8] sm:$0xff] }
   0x4   :  { %457 = vmatmul.mubr.msk.f32.vlgmr.msra.gmra.mrb[0].mxu0 %vm59_vm1, %v32_v2  ;;  %41 = vperm.xlu0 %507, %v35_v4  }
   0x5   :  { %459 = vmatprep.mubr.msk.f32.mxu0 %vm59_vm1, %v33_v3 }
   0x6   :  { %15 = vsyncpa [#allocation5], 0  ;;  %51 = vperm.xlu1 %508, %v37_v6   ;;  %v38_v9 = vld [vmem:[%s715_s2 + $0x18] sm:$0xff]  ;;  %v169_v10 = vld [vmem:[%s717_s4] sm:$0xff]  ;;  %vm193_vm2 = vcmask 261120   ;;  %v564_v37 = vmov 0.0|0.0  }
   0x7   :  { %v170_v11 = vld [vmem:[%s717_s4 + $0x8] sm:$0xff]  ;;  %v171_v12 = vld [vmem:[%s717_s4 + $0x10] sm:$0xff]  ;;  %v172_v13 = vld [vmem:[%s717_s4 + $0x18] sm:$0xff]  ;;  %495 = vmatprep.subr.bf16.mxu0 %v564_v37  ;;  %vm565_vm3 = vmmov 0   ;;  %v566_v38 = vmov 0.0   ;;  %s567_s14 = smov [#allocation2]  }
   0x8   :  { %460 = vmatmul.mubr.msk.f32.gmra.mrb[2].mxu0 %vm59_vm1, %v34_v7  ;;  %46 = vperm.xlu0 %507, %v36_v8   ;;  %v296_v14 = vld [vmem:[%s719_s6] sm:$0xff]  ;;  %v166_v34 = vld [vmem:[%s716_s3 + $0x8] sm:$0xff]  ;;  %v167_v35 = vld [vmem:[%s716_s3 + $0x10] sm:$0xff]  ;;  %s404_s15 = sshll.u32 %s567_s14, 4  ;;  %s405_s15 = int_to_ptr.vmem [resolvable:$true] %s404_s15 }
   0x9   :  { %v165_v15 = vld [vmem:[%s716_s3] sm:$0xff]  ;;  %v168_v36 = vld [vmem:[%s716_s3 + $0x18] sm:$0xff]  ;;  %484 = vmatprep.mubr.msk.f32.mxu0 %vm565_vm3, %v566_v38  ;;  %p520_p1 = scmp.lt.s32.totalorder %s405_s15, %s405_s15 }
   0xa   :  { %56 = vperm.xlu1 %508, %v38_v9   ;;  %470 = vmatprep.mubr.msk.f32.mxu1 %vm193_vm2, %v165_v15  ;;  %v295_v57 = vld [vmem:[%s718_s5] sm:$0xff]  ;;  %s515_s5 = scalar_lea.vmem %s405_s15, 128 }
   0xb   :  { %p516_p0 = scmp.ne.s32.totalorder %s405_s15, %s515_s5  ;;  %p521_p2 = scmp.lt.s32.totalorder %s515_s5, %s515_s5 }
   0xc   :  { %175 = vperm.xlu0 %507, %v169_v10  }
   0xd   :  { %p522_p3 = por %p521_p2, %p520_p1 }
   0xe   :  { %180 = vperm.xlu1 %508, %v170_v11  }
   0xf   :  { %p523_p4 = pnand %p522_p3, %p516_p0 }
  0x10   :  { %185 = vperm.xlu0 %507, %v171_v12  }
  0x12   :  { %190 = vperm.xlu1 %508, %v172_v13  }
  0x14   :  { %299 = vperm.xlu0 %507, %v296_v14  }
  0x83   :  { %v42_v16 = vpop.permute.xlu0 %41 }
  0x85   :  { %v52_v17 = vpop.permute.xlu1 %51 }
  0x87   :  { %v47_v18 = vpop.permute.xlu0 %46 }
  0x89   :  { %v57_v24 = vpop.permute.xlu1 %56 }
  0x8b   :  { %v176_v40 = vpop.permute.xlu0 %175 }
  0x8d   :  { %v181_v39 = vpop.permute.xlu1 %180 }
  0x8f   :  { %v186_v49 = vpop.permute.xlu0 %185 }
  0x91   :  { %v191_v46 = vpop.permute.xlu1 %190 }
  0x93   :  { %v300_v58 = vpop.permute.xlu0 %299 }
  0xd7   :  { %v458_v19 = vpop.f32.mrb[0].mxu0 }
  0xd8   :  { %v148_v20 = vadd.f32 %v458_v19, %v47_v18  ;;  %v142_v21 = vpop.f32.mrb[1].mxu0 }
  0xd9   :  { %v143_v22 = vadd.f32 %v142_v21, %v42_v16 }
  0xda   :  { %v162_v23 = vmax.f32 %v148_v20, 0.0 }
  0xdb   :  { %v161_v25 = vmax.f32 %v143_v22, 0.0  ;;  %v461_v26 = vpop.f32.mrb[2].mxu0 }
  0xdc   :  { %v158_v27 = vadd.f32 %v461_v26, %v57_v24  ;;  %v152_v28 = vpop.f32.mrb[3].mxu0 }
  0xdd   :  { %v153_v29 = vadd.f32 %v152_v28, %v52_v17  ;;  %v487_v30 = vpack.c.bf16 %v162_v23, %v161_v25 }
  0xde   :  { %v164_v31 = vmax.f32 %v158_v27, 0.0 }
  0xdf   :  { %v163_v32 = vmax.f32 %v153_v29, 0.0  ;;  %488 = vmatprep.subr.bf16.mxu1 %v487_v30 }
  0xe0   :  { %490 = vmatpush3.bf16.msra.mxu1 %v487_v30 }
  0xe1   :  { %v491_v33 = vpack.c.bf16 %v164_v31, %v163_v32 }
  0xe3   :  { %492 = vmatprep.subr.bf16.mxu1 %v491_v33 }
  0xe4   :  { %494 = vmatpush3.bf16.msra.mxu1 %v491_v33 }
  0xe7   :  { %471 = vmatmul.mubr.msk.f32.vlgmr.msra.gmra.mrb[0].mxu1 %vm193_vm2, %v166_v34 }
  0xe8   :  { %473 = vmatprep.mubr.msk.f32.mxu1 %vm193_vm2, %v167_v35 }
  0xeb   :  { %474 = vmatmul.mubr.msk.f32.gmra.mrb[2].mxu1 %vm193_vm2, %v168_v36 }
 0x1ba   :  { %v472_v41 = vpop.f32.mrb[0].mxu1 }
 0x1bb   :  { %v278_v42 = vadd.f32 %v472_v41, %v181_v39  ;;  %v272_v43 = vpop.f32.mrb[1].mxu1 }
 0x1bc   :  { %v273_v44 = vadd.f32 %v272_v43, %v176_v40 }
 0x1bd   :  { %v292_v45 = vmax.f32 %v278_v42, 0.0 }
 0x1be   :  { %v291_v47 = vmax.f32 %v273_v44, 0.0  ;;  %v475_v48 = vpop.f32.mrb[2].mxu1 }
 0x1bf   :  { %v288_v50 = vadd.f32 %v475_v48, %v191_v46  ;;  %v282_v51 = vpop.f32.mrb[3].mxu1 }
 0x1c0   :  { %v496_v52 = vpack.c.bf16 %v292_v45, %v291_v47  ;;  %v283_v53 = vadd.f32 %v282_v51, %v186_v49 }
 0x1c1   :  { %v294_v54 = vmax.f32 %v288_v50, 0.0 }
 0x1c2   :  { %v293_v55 = vmax.f32 %v283_v53, 0.0  ;;  %497 = vmatpush3.bf16.msra.mxu0 %v496_v52 }
 0x1c3   :  { %498 = vmatprep.subr.bf16.mxu0 %v564_v37 }
 0x1c4   :  { %v499_v56 = vpack.c.bf16 %v294_v54, %v293_v55 }
 0x1c6   :  { %500 = vmatpush3.bf16.msra.mxu0 %v499_v56 }
 0x1c9   :  { %485 = vmatmul.mubr.msk.f32.vlgmr.msra.gmra.mrb[4].mxu0 %vm193_vm2, %v295_v57 }
 0x29c   :  { %v371_v59 = vpop.f32.mrb[4].mxu0 }
 0x29d   :  { %v372_v60 = vadd.f32 %v371_v59, %v300_v58  ;;  %v486_v61 = vpop.f32.mrb[5].mxu0 }
 0x29f   :  { %v375_v62 = vsub.f32 0.0, %v372_v60  ;;  %v382_v6 = vadd.f32 %v372_v60, %v617_v0 }
 0x2a1   :  { %v376_v63 = vmul.f32 1.442695, %v375_v62 }
 0x2a3   :  { %509 = vpow2.f32 %v376_v63 }
 0x2ad   :  { %v510_v1 = vpop.eup %509 }
 0x2ae   :  { %v378_v2 = vadd.f32 1.0, %v510_v1 }
 0x2b0   :  { %511 = vlog2.f32 %v378_v2 }
 0x2b1   :  { %513 = vrcp.f32 %v378_v2 }
 0x2ba   :  { %v512_v3 = vpop.eup %511 }
 0x2bb   :  { %v514_v4 = vpop.eup %513  ;;  %v380_v5 = vmul.f32 0.6931472, %v512_v3 }
 0x2bc   :  { %v384_v7 = vrot.slane %v514_v4, 4 }
 0x2bd   :  { %v387_v8 = vsel %vm72_vm0, %v380_v5, 0.0 }
 0x2be   :  { %v386_v9 = vmul.f32 %v384_v7, %v382_v6  ;;  %v388_v10 = vrot.slane %v387_v8, 4 }
 0x2c0   :  { %396 = vst [vmem:[#allocation2] sm:$0xf0] %v386_v9  ;;  %v389_v11 = vadd.f32 %v388_v10, %v387_v8 }
 0x2c1   :  { %526 = shalt.err (!%p523_p4)
}
 0x2c2   :  { %s527_s18 = scalar_lea.hbm %s720_s7, 128 }
 0x2c3   :  { %p528_p5 = scmp.ne.s32.totalorder %s720_s7, %s527_s18  ;;  %p531_p6 = scmp.lt.u32.totalorder %s527_s18, %s720_s7 }
 0x2c5   :  { %p533_p7 = pnand %p531_p6, %p528_p5 }
 0x2c7   :  { %536 = shalt.err (!%p533_p7)
}
 0x2c8   :  { %407 = dma.vmem_to_hbm [thread:$0]  %s405_s15, 128, %s720_s7, [#allocation3]   ;;  %v390_v0 = vrot.slane %v389_v11, 2 }
 0x2c9   :  { %s568_s24 = smov [#allocation4]  }
 0x2ca   :  { %v391_v12 = vadd.f32 %v390_v0, %v389_v11  ;;  %s414_s25 = sshll.u32 %s568_s24, 4  ;;  %s415_s25 = int_to_ptr.vmem [resolvable:$true] %s414_s25 }
 0x2cb   :  { %s537_s26 = scalar_lea.vmem %s415_s25, 16  ;;  %s541_s27 = scalar_lea.vmem %s415_s25, 32 }
 0x2cc   :  { %v392_v13 = vrot.slane %v391_v12, 1  ;;  %p538_p8 = scmp.ne.s32.totalorder %s415_s25, %s537_s26  ;;  %p542_p9 = scmp.lt.s32.totalorder %s415_s25, %s415_s25 }
 0x2cd   :  { %p543_p10 = scmp.lt.s32.totalorder %s541_s27, %s537_s26 }
 0x2ce   :  { %v393_v14 = vadd.f32 %v392_v13, %v391_v12 }
 0x2cf   :  { %p544_p11 = por %p543_p10, %p542_p9 }
 0x2d0   :  { %v394_v15 = vsub.f32 0.0, %v393_v14 }
 0x2d1   :  { %p545_p12 = pnand %p544_p11, %p538_p8 }
 0x2d2   :  { %397 = vst [vmem:[#allocation4] sm:$0x1] %v394_v15 }
 0x2d3   :  { %548 = shalt.err (!%p545_p12)
}
 0x2d4   :  { %s549_s7 = scalar_lea.hbm %s721_s8, 16 }
 0x2d5   :  { %p550_p13 = scmp.ne.s32.totalorder %s721_s8, %s549_s7  ;;  %p553_p0 = scmp.lt.u32.totalorder %s549_s7, %s721_s8 }
 0x2d7   :  { %p555_p1 = pnand %p553_p0, %p550_p13 }
 0x2d9   :  { %558 = shalt.err (!%p555_p1)
}
 0x2da   :  { %417 = dma.vmem_to_hbm [thread:$0]  %s415_s25, 16, %s721_s8, [#allocation5]  }
 0x2db   :  { %559 = dma.done.wait [#allocation3], 128  }
 0x2dc   :  { %560 = vsyncadd [#allocation3], 4294967168 }
 0x2dd   :  { %561 = dma.done.wait [#allocation5], 16  }
 0x2de   :  { %562 = vsyncadd [#allocation5], 4294967280 }
 0x2df   :  { %424 = vsyncpa [#allocation3], 1 }
 0x2e0   :  { %425 = vsyncpa [#allocation5], 1 }

</bundles_post_ra>
